<compile_context>
chip_gen: v5e
topology: v5e:2x2
jax: 0.10.0
libtpu: 0.0.40
codegen_flags: <defaults>
</compile_context>

<pallas_src>
import math

import jax
import jax.numpy as jnp
from jax.experimental import pallas as pl
from jax.experimental.pallas import tpu as pltpu

OBS_NOISE_STD = 0.01                                  # self.obs_noise_std
VAR_EPS = 1e-5                                        # std = sqrt(|var| + 1e-5)
LOG_SIGMA2 = math.log(OBS_NOISE_STD)                  # folded at trace time
INV_TWO_SIGMA2 = 1.0 / (2.0 * OBS_NOISE_STD * OBS_NOISE_STD)


def stabilize_net_forward(x, params, h_dim, outdim):
    """Pallas implementation of StabilizeNet.forward(x, gt=None)."""
    T, B, X = x.shape
    H = h_dim
    dlen = T - 1
    assert outdim == X, "gt=None path predicts x[t+1]; outdim must equal x_dim"

    # ---- weight prep (plain-JAX glue): fuse + pre-transpose ----
    wih = params["w_ih"].T                        # (X, 3H), columns = [r | z | n]
    whh = params["w_hh"].T                        # (H, 3H)
    w1 = params["dec_w1"].T                       # (H, H)
    b1 = params["dec_b1"].reshape(1, H)
    w2 = params["dec_w2"].T                       # (H, 2*outdim), cols = [mean | var]
    b2 = params["dec_b2"].reshape(1, 2 * outdim)

    # Time-major flatten so the kernel never reshapes: row t*B + b == x[t, b].
    x2 = x.reshape(T * B, X)

    def kernel(x2_ref, wih_ref, whh_ref, w1_ref, b1_ref, w2_ref, b2_ref,
               ll_ref, mse_ref, pred_ref, gi_scr, h_scr):
        # Phase 1: input projection for ALL timesteps, hoisted out of the
        # recurrence (one MXU pass instead of dlen tiny ones).
        gi_scr[...] = jnp.dot(x2_ref[0:dlen * B, :], wih_ref[...],
                              preferred_element_type=jnp.float32)

        whh_v = whh_ref[...]          # hoist weight load out of the unrolled loop

        # Phase 2: sequential GRU recurrence (PyTorch gate order r, z, n).
        # Statically unrolled — dlen is small here, all slices/offsets static.
        # TODO(synk): for long sequences switch to lax.fori_loop with a
        # (dlen, B, H) scratch and dynamic first-axis indexing.
        h = jnp.zeros((B, H), jnp.float32)
        for t in range(dlen):
            lo = t * B
            gi_t = gi_scr[lo:lo + B, :]                                   # (B, 3H)
            gh = jnp.dot(h, whh_v, preferred_element_type=jnp.float32)    # (B, 3H)
            r = jax.nn.sigmoid(gi_t[:, 0:H] + gh[:, 0:H])
            z = jax.nn.sigmoid(gi_t[:, H:2 * H] + gh[:, H:2 * H])
            n = jnp.tanh(gi_t[:, 2 * H:3 * H] + r * gh[:, 2 * H:3 * H])
            h = (1.0 - z) * n + z * h
            h_scr[lo:lo + B, :] = h

        # Phase 3: batched decoder + losses over all (dlen*B) rows at once.
        h_all = h_scr[...]                                         # (dlen*B, H)
        d1 = jnp.maximum(
            jnp.dot(h_all, w1_ref[...], preferred_element_type=jnp.float32)
            + b1_ref[...], 0.0)
        pred = (jnp.dot(d1, w2_ref[...], preferred_element_type=jnp.float32)
                + b2_ref[...])                                     # (dlen*B, 2*outdim)
        pred_ref[...] = pred          # one packed [mean | var] store (lane-dense)

        mean = pred[:, 0:outdim]
        var = pred[:, outdim:2 * outdim]
        target = x2_ref[B:(dlen + 1) * B, :]       # == x[1:T] flattened
        diff = mean - target
        v = jnp.abs(var) + VAR_EPS                 # == std**2 (sqrt skipped)
        kl = (LOG_SIGMA2 - 0.5 * jnp.log(v)
              + (v + diff * diff) * INV_TWO_SIGMA2 - 0.5)
        ll_ref[...] = jnp.sum(kl, keepdims=True)
        mse_ref[...] = jnp.sum(diff * diff, keepdims=True)

    def full_spec(a):
        nd = a.ndim
        return pl.BlockSpec(a.shape, lambda t, _nd=nd: (0,) * _nd)

    inputs = (x2, wih, whh, w1, b1, w2, b2)
    out_shape = (
        jax.ShapeDtypeStruct((1, 1), jnp.float32),                   # log_like
        jax.ShapeDtypeStruct((1, 1), jnp.float32),                   # mse_loss
        jax.ShapeDtypeStruct((dlen * B, 2 * outdim), jnp.float32),   # packed [mean|var]
    )
    out_specs = (
        pl.BlockSpec((1, 1), lambda t: (0, 0)),
        pl.BlockSpec((1, 1), lambda t: (0, 0)),
        pl.BlockSpec((dlen * B, 2 * outdim), lambda t: (0, 0)),
    )

    fn = pl.pallas_call(
        kernel,
        out_shape=out_shape,
        grid_spec=pltpu.PrefetchScalarGridSpec(
            num_scalar_prefetch=0,
            grid=(1,),                     # single invocation: no per-step overhead
            in_specs=[full_spec(a) for a in inputs],
            out_specs=out_specs,
            scratch_shapes=[
                pltpu.VMEM((dlen * B, 3 * H), jnp.float32),   # hoisted x @ W_ih
                pltpu.VMEM((dlen * B, H), jnp.float32),       # all hidden states
            ]),
        compiler_params=pltpu.CompilerParams(
            dimension_semantics=("arbitrary",)),
    )
    ll, mse, pred = fn(*inputs)
    pred = pred.reshape(dlen, B, 2 * outdim)
    return ll[0, 0], mse[0, 0], (pred[..., :outdim], pred[..., outdim:])


def reference_forward(x, params, h_dim, outdim):
    """Pure-JAX reference mirroring the PyTorch semantics (per-step, with sqrt)."""
    T, B, X = x.shape
    H = h_dim
    w_ih, w_hh = params["w_ih"], params["w_hh"]
    h = jnp.zeros((B, H), jnp.float32)
    ll = jnp.float32(0.0)
    mse = jnp.float32(0.0)
    means, vars_ = [], []
    for t in range(T - 1):
        gi = x[t] @ w_ih.T
        gh = h @ w_hh.T
        r = jax.nn.sigmoid(gi[:, :H] + gh[:, :H])
        z = jax.nn.sigmoid(gi[:, H:2 * H] + gh[:, H:2 * H])
        n = jnp.tanh(gi[:, 2 * H:] + r * gh[:, 2 * H:])
        h = (1.0 - z) * n + z * h
        d1 = jax.nn.relu(h @ params["dec_w1"].T + params["dec_b1"])
        pred = d1 @ params["dec_w2"].T + params["dec_b2"]
        mean, var = pred[:, :outdim], pred[:, outdim:]
        std = jnp.sqrt(jnp.abs(var) + VAR_EPS)
        tgt = x[t + 1]
        kl = (jnp.log(jnp.float32(OBS_NOISE_STD)) - jnp.log(std)
              + (std ** 2 + (mean - tgt) ** 2) / (2.0 * OBS_NOISE_STD ** 2) - 0.5)
        ll = ll + jnp.sum(kl)
        mse = mse + jnp.sum((mean - tgt) ** 2)
        means.append(mean)
        vars_.append(var)
    return ll, mse, (jnp.stack(means), jnp.stack(vars_))


def init_params(key, x_dim, h_dim, outdim, stdv=0.1):
    """Deterministic init (mirrors reset_parameters: N(0, stdv))."""
    ks = jax.random.split(key, 6)
    return {
        "w_ih": stdv * jax.random.normal(ks[0], (3 * h_dim, x_dim), jnp.float32),
        "w_hh": stdv * jax.random.normal(ks[1], (3 * h_dim, h_dim), jnp.float32),
        "dec_w1": stdv * jax.random.normal(ks[2], (h_dim, h_dim), jnp.float32),
        "dec_b1": stdv * jax.random.normal(ks[3], (h_dim,), jnp.float32),
        "dec_w2": stdv * jax.random.normal(ks[4], (2 * outdim, h_dim), jnp.float32),
        "dec_b2": stdv * jax.random.normal(ks[5], (2 * outdim,), jnp.float32),
    }


if __name__ == "__main__":
    # small shapes: seq=8, batch=4, x_dim=8, h_dim=32, outdim=x_dim (gt=None path)
    T, B, X, H = 8, 4, 8, 32
    OUT = X
    key = jax.random.PRNGKey(0)
    k_x, k_p = jax.random.split(key)
    x = jax.random.normal(k_x, (T, B, X), jnp.float32)
    params = init_params(k_p, X, H, OUT)

    ll, mse, (means, vars_) = stabilize_net_forward(x, params, H, OUT)
    jax.block_until_ready((ll, mse, means, vars_))

    ll_r, mse_r, (means_r, vars_r) = reference_forward(x, params, H, OUT)
    assert jnp.allclose(ll, ll_r, rtol=1e-4, atol=1e-3), (ll, ll_r)
    assert jnp.allclose(mse, mse_r, rtol=1e-4, atol=1e-3), (mse, mse_r)
    assert jnp.allclose(means, means_r, rtol=1e-4, atol=1e-4)
    assert jnp.allclose(vars_, vars_r, rtol=1e-4, atol=1e-4)

    print("KERNEL_OK")
</pallas_src>

<mosaic_0001>
module attributes {stable_mosaic.version = 11 : i64} {
  func.func @kernel(%arg0: i32, %arg1: memref<32x8xf32, #tpu.memory_space<vmem>>, %arg2: memref<8x96xf32, #tpu.memory_space<vmem>>, %arg3: memref<32x96xf32, #tpu.memory_space<vmem>>, %arg4: memref<32x32xf32, #tpu.memory_space<vmem>>, %arg5: memref<1x32xf32, #tpu.memory_space<vmem>>, %arg6: memref<32x16xf32, #tpu.memory_space<vmem>>, %arg7: memref<1x16xf32, #tpu.memory_space<vmem>>, %arg8: memref<1x1xf32, #tpu.memory_space<vmem>>, %arg9: memref<1x1xf32, #tpu.memory_space<vmem>>, %arg10: memref<28x16xf32, #tpu.memory_space<vmem>>, %arg11: memref<28x96xf32, #tpu.memory_space<vmem>>, %arg12: memref<28x32xf32, #tpu.memory_space<vmem>>) attributes {dimension_semantics = [#tpu.dimension_semantics<arbitrary>], iteration_bounds = array<i64: 1>, scalar_prefetch = 0 : i64, scratch_operands = 2 : i64, tpu.core_type = #tpu.core_type<tc>, window_params = [{pipeline_mode = #tpu.pipeline_mode<synchronous>, transform_indices = @transform_0, window_bounds = array<i64: 32, 8>}, {pipeline_mode = #tpu.pipeline_mode<synchronous>, transform_indices = @transform_1, window_bounds = array<i64: 8, 96>}, {pipeline_mode = #tpu.pipeline_mode<synchronous>, transform_indices = @transform_2, window_bounds = array<i64: 32, 96>}, {pipeline_mode = #tpu.pipeline_mode<synchronous>, transform_indices = @transform_3, window_bounds = array<i64: 32, 32>}, {pipeline_mode = #tpu.pipeline_mode<synchronous>, transform_indices = @transform_4, window_bounds = array<i64: 1, 32>}, {pipeline_mode = #tpu.pipeline_mode<synchronous>, transform_indices = @transform_5, window_bounds = array<i64: 32, 16>}, {pipeline_mode = #tpu.pipeline_mode<synchronous>, transform_indices = @transform_6, window_bounds = array<i64: 1, 16>}, {pipeline_mode = #tpu.pipeline_mode<synchronous>, transform_indices = @transform_7, window_bounds = array<i64: 1, 1>}, {pipeline_mode = #tpu.pipeline_mode<synchronous>, transform_indices = @transform_8, window_bounds = array<i64: 1, 1>}, {pipeline_mode = #tpu.pipeline_mode<synchronous>, transform_indices = @transform_9, window_bounds = array<i64: 28, 16>}]} {
    %c0 = arith.constant 0 : index
    %c0_0 = arith.constant 0 : index
    %0 = vector.load %arg1[%c0, %c0_0] : memref<32x8xf32, #tpu.memory_space<vmem>>, vector<28x8xf32>
    %c0_1 = arith.constant 0 : index
    %c0_2 = arith.constant 0 : index
    %1 = vector.load %arg2[%c0_1, %c0_2] : memref<8x96xf32, #tpu.memory_space<vmem>>, vector<8x96xf32>
    %cst = arith.constant dense<0.000000e+00> : vector<28x96xf32>
    %2 = tpu.matmul %0, %1, %cst {dimension_numbers = #tpu.dot_dimension_numbers<[1], [0], [0], [1], [0, 0, 1, 1], [], []>} : vector<28x8xf32>, vector<8x96xf32>, vector<28x96xf32> -> vector<28x96xf32>
    %c0_3 = arith.constant 0 : index
    %c0_4 = arith.constant 0 : index
    %3 = vector.load %arg11[%c0_3, %c0_4] : memref<28x96xf32, #tpu.memory_space<vmem>>, vector<28x96xf32>
    tpu.vector_store %arg11[%c0_3, %c0_4], %2 {strides = array<i32>} : memref<28x96xf32, #tpu.memory_space<vmem>>, vector<28x96xf32>,
    %c0_5 = arith.constant 0 : index
    %c0_6 = arith.constant 0 : index
    %4 = vector.load %arg3[%c0_5, %c0_6] : memref<32x96xf32, #tpu.memory_space<vmem>>, vector<32x96xf32>
    %cst_7 = arith.constant 0.000000e+00 : f32
    %5 = vector.broadcast %cst_7 : f32 to vector<4x32xf32>
    %c0_8 = arith.constant 0 : index
    %c0_9 = arith.constant 0 : index
    %6 = vector.load %arg11[%c0_8, %c0_9] : memref<28x96xf32, #tpu.memory_space<vmem>>, vector<4x96xf32>
    %cst_10 = arith.constant dense<0.000000e+00> : vector<4x96xf32>
    %7 = tpu.matmul %5, %4, %cst_10 {dimension_numbers = #tpu.dot_dimension_numbers<[1], [0], [0], [1], [0, 0, 1, 1], [], []>} : vector<4x32xf32>, vector<32x96xf32>, vector<4x96xf32> -> vector<4x96xf32>
    %8 = vector.extract_strided_slice %6 {offsets = [0, 0], sizes = [4, 32], strides = [1, 1]} : vector<4x96xf32> to vector<4x32xf32>
    %9 = vector.extract_strided_slice %7 {offsets = [0, 0], sizes = [4, 32], strides = [1, 1]} : vector<4x96xf32> to vector<4x32xf32>
    %10 = arith.addf %8, %9 : vector<4x32xf32>
    %11 = arith.negf %10 : vector<4x32xf32>
    %12 = math.exp %11 : vector<4x32xf32>
    %cst_11 = arith.constant 1.000000e+00 : f32
    %13 = vector.broadcast %cst_11 : f32 to vector<4x32xf32>
    %14 = arith.addf %13, %12 : vector<4x32xf32>
    %15 = arith.divf %13, %14 : vector<4x32xf32>
    %16 = vector.extract_strided_slice %6 {offsets = [0, 32], sizes = [4, 32], strides = [1, 1]} : vector<4x96xf32> to vector<4x32xf32>
    %17 = vector.extract_strided_slice %7 {offsets = [0, 32], sizes = [4, 32], strides = [1, 1]} : vector<4x96xf32> to vector<4x32xf32>
    %18 = arith.addf %16, %17 : vector<4x32xf32>
    %19 = arith.negf %18 : vector<4x32xf32>
    %20 = math.exp %19 : vector<4x32xf32>
    %cst_12 = arith.constant 1.000000e+00 : f32
    %21 = vector.broadcast %cst_12 : f32 to vector<4x32xf32>
    %22 = arith.addf %21, %20 : vector<4x32xf32>
    %23 = arith.divf %21, %22 : vector<4x32xf32>
    %24 = vector.extract_strided_slice %6 {offsets = [0, 64], sizes = [4, 32], strides = [1, 1]} : vector<4x96xf32> to vector<4x32xf32>
    %25 = vector.extract_strided_slice %7 {offsets = [0, 64], sizes = [4, 32], strides = [1, 1]} : vector<4x96xf32> to vector<4x32xf32>
    %26 = arith.mulf %15, %25 : vector<4x32xf32>
    %27 = arith.addf %24, %26 : vector<4x32xf32>
    %28 = math.tanh %27 : vector<4x32xf32>
    %cst_13 = arith.constant 1.000000e+00 : f32
    %29 = vector.broadcast %cst_13 : f32 to vector<4x32xf32>
    %30 = arith.subf %29, %23 : vector<4x32xf32>
    %31 = arith.mulf %30, %28 : vector<4x32xf32>
    %32 = arith.mulf %23, %5 : vector<4x32xf32>
    %33 = arith.addf %31, %32 : vector<4x32xf32>
    %c0_14 = arith.constant 0 : index
    %c0_15 = arith.constant 0 : index
    %34 = vector.load %arg12[%c0_14, %c0_15] : memref<28x32xf32, #tpu.memory_space<vmem>>, vector<4x32xf32>
    tpu.vector_store %arg12[%c0_14, %c0_15], %33 {strides = array<i32>} : memref<28x32xf32, #tpu.memory_space<vmem>>, vector<4x32xf32>,
    %c4 = arith.constant 4 : index
    %c0_16 = arith.constant 0 : index
    %35 = vector.load %arg11[%c4, %c0_16] : memref<28x96xf32, #tpu.memory_space<vmem>>, vector<4x96xf32>
    %cst_17 = arith.constant dense<0.000000e+00> : vector<4x96xf32>
    %36 = tpu.matmul %33, %4, %cst_17 {dimension_numbers = #tpu.dot_dimension_numbers<[1], [0], [0], [1], [0, 0, 1, 1], [], []>} : vector<4x32xf32>, vector<32x96xf32>, vector<4x96xf32> -> vector<4x96xf32>
    %37 = vector.extract_strided_slice %35 {offsets = [0, 0], sizes = [4, 32], strides = [1, 1]} : vector<4x96xf32> to vector<4x32xf32>
    %38 = vector.extract_strided_slice %36 {offsets = [0, 0], sizes = [4, 32], strides = [1, 1]} : vector<4x96xf32> to vector<4x32xf32>
    %39 = arith.addf %37, %38 : vector<4x32xf32>
    %40 = arith.negf %39 : vector<4x32xf32>
    %41 = math.exp %40 : vector<4x32xf32>
    %cst_18 = arith.constant 1.000000e+00 : f32
    %42 = vector.broadcast %cst_18 : f32 to vector<4x32xf32>
    %43 = arith.addf %42, %41 : vector<4x32xf32>
    %44 = arith.divf %42, %43 : vector<4x32xf32>
    %45 = vector.extract_strided_slice %35 {offsets = [0, 32], sizes = [4, 32], strides = [1, 1]} : vector<4x96xf32> to vector<4x32xf32>
    %46 = vector.extract_strided_slice %36 {offsets = [0, 32], sizes = [4, 32], strides = [1, 1]} : vector<4x96xf32> to vector<4x32xf32>
    %47 = arith.addf %45, %46 : vector<4x32xf32>
    %48 = arith.negf %47 : vector<4x32xf32>
    %49 = math.exp %48 : vector<4x32xf32>
    %cst_19 = arith.constant 1.000000e+00 : f32
    %50 = vector.broadcast %cst_19 : f32 to vector<4x32xf32>
    %51 = arith.addf %50, %49 : vector<4x32xf32>
    %52 = arith.divf %50, %51 : vector<4x32xf32>
    %53 = vector.extract_strided_slice %35 {offsets = [0, 64], sizes = [4, 32], strides = [1, 1]} : vector<4x96xf32> to vector<4x32xf32>
    %54 = vector.extract_strided_slice %36 {offsets = [0, 64], sizes = [4, 32], strides = [1, 1]} : vector<4x96xf32> to vector<4x32xf32>
    %55 = arith.mulf %44, %54 : vector<4x32xf32>
    %56 = arith.addf %53, %55 : vector<4x32xf32>
    %57 = math.tanh %56 : vector<4x32xf32>
    %cst_20 = arith.constant 1.000000e+00 : f32
    %58 = vector.broadcast %cst_20 : f32 to vector<4x32xf32>
    %59 = arith.subf %58, %52 : vector<4x32xf32>
    %60 = arith.mulf %59, %57 : vector<4x32xf32>
    %61 = arith.mulf %52, %33 : vector<4x32xf32>
    %62 = arith.addf %60, %61 : vector<4x32xf32>
    %c4_21 = arith.constant 4 : index
    %c0_22 = arith.constant 0 : index
    %63 = vector.load %arg12[%c4_21, %c0_22] : memref<28x32xf32, #tpu.memory_space<vmem>>, vector<4x32xf32>
    tpu.vector_store %arg12[%c4_21, %c0_22], %62 {strides = array<i32>} : memref<28x32xf32, #tpu.memory_space<vmem>>, vector<4x32xf32>,
    %c8 = arith.constant 8 : index
    %c0_23 = arith.constant 0 : index
    %64 = vector.load %arg11[%c8, %c0_23] : memref<28x96xf32, #tpu.memory_space<vmem>>, vector<4x96xf32>
    %cst_24 = arith.constant dense<0.000000e+00> : vector<4x96xf32>
    %65 = tpu.matmul %62, %4, %cst_24 {dimension_numbers = #tpu.dot_dimension_numbers<[1], [0], [0], [1], [0, 0, 1, 1], [], []>} : vector<4x32xf32>, vector<32x96xf32>, vector<4x96xf32> -> vector<4x96xf32>
    %66 = vector.extract_strided_slice %64 {offsets = [0, 0], sizes = [4, 32], strides = [1, 1]} : vector<4x96xf32> to vector<4x32xf32>
    %67 = vector.extract_strided_slice %65 {offsets = [0, 0], sizes = [4, 32], strides = [1, 1]} : vector<4x96xf32> to vector<4x32xf32>
    %68 = arith.addf %66, %67 : vector<4x32xf32>
    %69 = arith.negf %68 : vector<4x32xf32>
    %70 = math.exp %69 : vector<4x32xf32>
    %cst_25 = arith.constant 1.000000e+00 : f32
    %71 = vector.broadcast %cst_25 : f32 to vector<4x32xf32>
    %72 = arith.addf %71, %70 : vector<4x32xf32>
    %73 = arith.divf %71, %72 : vector<4x32xf32>
    %74 = vector.extract_strided_slice %64 {offsets = [0, 32], sizes = [4, 32], strides = [1, 1]} : vector<4x96xf32> to vector<4x32xf32>
    %75 = vector.extract_strided_slice %65 {offsets = [0, 32], sizes = [4, 32], strides = [1, 1]} : vector<4x96xf32> to vector<4x32xf32>
    %76 = arith.addf %74, %75 : vector<4x32xf32>
    %77 = arith.negf %76 : vector<4x32xf32>
    %78 = math.exp %77 : vector<4x32xf32>
    %cst_26 = arith.constant 1.000000e+00 : f32
    %79 = vector.broadcast %cst_26 : f32 to vector<4x32xf32>
    %80 = arith.addf %79, %78 : vector<4x32xf32>
    %81 = arith.divf %79, %80 : vector<4x32xf32>
    %82 = vector.extract_strided_slice %64 {offsets = [0, 64], sizes = [4, 32], strides = [1, 1]} : vector<4x96xf32> to vector<4x32xf32>
    %83 = vector.extract_strided_slice %65 {offsets = [0, 64], sizes = [4, 32], strides = [1, 1]} : vector<4x96xf32> to vector<4x32xf32>
    %84 = arith.mulf %73, %83 : vector<4x32xf32>
    %85 = arith.addf %82, %84 : vector<4x32xf32>
    %86 = math.tanh %85 : vector<4x32xf32>
    %cst_27 = arith.constant 1.000000e+00 : f32
    %87 = vector.broadcast %cst_27 : f32 to vector<4x32xf32>
    %88 = arith.subf %87, %81 : vector<4x32xf32>
    %89 = arith.mulf %88, %86 : vector<4x32xf32>
    %90 = arith.mulf %81, %62 : vector<4x32xf32>
    %91 = arith.addf %89, %90 : vector<4x32xf32>
    %c8_28 = arith.constant 8 : index
    %c0_29 = arith.constant 0 : index
    %92 = vector.load %arg12[%c8_28, %c0_29] : memref<28x32xf32, #tpu.memory_space<vmem>>, vector<4x32xf32>
    tpu.vector_store %arg12[%c8_28, %c0_29], %91 {strides = array<i32>} : memref<28x32xf32, #tpu.memory_space<vmem>>, vector<4x32xf32>,
    %c12 = arith.constant 12 : index
    %c0_30 = arith.constant 0 : index
    %93 = vector.load %arg11[%c12, %c0_30] : memref<28x96xf32, #tpu.memory_space<vmem>>, vector<4x96xf32>
    %cst_31 = arith.constant dense<0.000000e+00> : vector<4x96xf32>
    %94 = tpu.matmul %91, %4, %cst_31 {dimension_numbers = #tpu.dot_dimension_numbers<[1], [0], [0], [1], [0, 0, 1, 1], [], []>} : vector<4x32xf32>, vector<32x96xf32>, vector<4x96xf32> -> vector<4x96xf32>
    %95 = vector.extract_strided_slice %93 {offsets = [0, 0], sizes = [4, 32], strides = [1, 1]} : vector<4x96xf32> to vector<4x32xf32>
    %96 = vector.extract_strided_slice %94 {offsets = [0, 0], sizes = [4, 32], strides = [1, 1]} : vector<4x96xf32> to vector<4x32xf32>
    %97 = arith.addf %95, %96 : vector<4x32xf32>
    %98 = arith.negf %97 : vector<4x32xf32>
    %99 = math.exp %98 : vector<4x32xf32>
    %cst_32 = arith.constant 1.000000e+00 : f32
    %100 = vector.broadcast %cst_32 : f32 to vector<4x32xf32>
    %101 = arith.addf %100, %99 : vector<4x32xf32>
    %102 = arith.divf %100, %101 : vector<4x32xf32>
    %103 = vector.extract_strided_slice %93 {offsets = [0, 32], sizes = [4, 32], strides = [1, 1]} : vector<4x96xf32> to vector<4x32xf32>
    %104 = vector.extract_strided_slice %94 {offsets = [0, 32], sizes = [4, 32], strides = [1, 1]} : vector<4x96xf32> to vector<4x32xf32>
    %105 = arith.addf %103, %104 : vector<4x32xf32>
    %106 = arith.negf %105 : vector<4x32xf32>
    %107 = math.exp %106 : vector<4x32xf32>
    %cst_33 = arith.constant 1.000000e+00 : f32
    %108 = vector.broadcast %cst_33 : f32 to vector<4x32xf32>
    %109 = arith.addf %108, %107 : vector<4x32xf32>
    %110 = arith.divf %108, %109 : vector<4x32xf32>
    %111 = vector.extract_strided_slice %93 {offsets = [0, 64], sizes = [4, 32], strides = [1, 1]} : vector<4x96xf32> to vector<4x32xf32>
    %112 = vector.extract_strided_slice %94 {offsets = [0, 64], sizes = [4, 32], strides = [1, 1]} : vector<4x96xf32> to vector<4x32xf32>
    %113 = arith.mulf %102, %112 : vector<4x32xf32>
    %114 = arith.addf %111, %113 : vector<4x32xf32>
    %115 = math.tanh %114 : vector<4x32xf32>
    %cst_34 = arith.constant 1.000000e+00 : f32
    %116 = vector.broadcast %cst_34 : f32 to vector<4x32xf32>
    %117 = arith.subf %116, %110 : vector<4x32xf32>
    %118 = arith.mulf %117, %115 : vector<4x32xf32>
    %119 = arith.mulf %110, %91 : vector<4x32xf32>
    %120 = arith.addf %118, %119 : vector<4x32xf32>
    %c12_35 = arith.constant 12 : index
    %c0_36 = arith.constant 0 : index
    %121 = vector.load %arg12[%c12_35, %c0_36] : memref<28x32xf32, #tpu.memory_space<vmem>>, vector<4x32xf32>
    tpu.vector_store %arg12[%c12_35, %c0_36], %120 {strides = array<i32>} : memref<28x32xf32, #tpu.memory_space<vmem>>, vector<4x32xf32>,
    %c16 = arith.constant 16 : index
    %c0_37 = arith.constant 0 : index
    %122 = vector.load %arg11[%c16, %c0_37] : memref<28x96xf32, #tpu.memory_space<vmem>>, vector<4x96xf32>
    %cst_38 = arith.constant dense<0.000000e+00> : vector<4x96xf32>
    %123 = tpu.matmul %120, %4, %cst_38 {dimension_numbers = #tpu.dot_dimension_numbers<[1], [0], [0], [1], [0, 0, 1, 1], [], []>} : vector<4x32xf32>, vector<32x96xf32>, vector<4x96xf32> -> vector<4x96xf32>
    %124 = vector.extract_strided_slice %122 {offsets = [0, 0], sizes = [4, 32], strides = [1, 1]} : vector<4x96xf32> to vector<4x32xf32>
    %125 = vector.extract_strided_slice %123 {offsets = [0, 0], sizes = [4, 32], strides = [1, 1]} : vector<4x96xf32> to vector<4x32xf32>
    %126 = arith.addf %124, %125 : vector<4x32xf32>
    %127 = arith.negf %126 : vector<4x32xf32>
    %128 = math.exp %127 : vector<4x32xf32>
    %cst_39 = arith.constant 1.000000e+00 : f32
    %129 = vector.broadcast %cst_39 : f32 to vector<4x32xf32>
    %130 = arith.addf %129, %128 : vector<4x32xf32>
    %131 = arith.divf %129, %130 : vector<4x32xf32>
    %132 = vector.extract_strided_slice %122 {offsets = [0, 32], sizes = [4, 32], strides = [1, 1]} : vector<4x96xf32> to vector<4x32xf32>
    %133 = vector.extract_strided_slice %123 {offsets = [0, 32], sizes = [4, 32], strides = [1, 1]} : vector<4x96xf32> to vector<4x32xf32>
    %134 = arith.addf %132, %133 : vector<4x32xf32>
    %135 = arith.negf %134 : vector<4x32xf32>
    %136 = math.exp %135 : vector<4x32xf32>
    %cst_40 = arith.constant 1.000000e+00 : f32
    %137 = vector.broadcast %cst_40 : f32 to vector<4x32xf32>
    %138 = arith.addf %137, %136 : vector<4x32xf32>
    %139 = arith.divf %137, %138 : vector<4x32xf32>
    %140 = vector.extract_strided_slice %122 {offsets = [0, 64], sizes = [4, 32], strides = [1, 1]} : vector<4x96xf32> to vector<4x32xf32>
    %141 = vector.extract_strided_slice %123 {offsets = [0, 64], sizes = [4, 32], strides = [1, 1]} : vector<4x96xf32> to vector<4x32xf32>
    %142 = arith.mulf %131, %141 : vector<4x32xf32>
    %143 = arith.addf %140, %142 : vector<4x32xf32>
    %144 = math.tanh %143 : vector<4x32xf32>
    %cst_41 = arith.constant 1.000000e+00 : f32
    %145 = vector.broadcast %cst_41 : f32 to vector<4x32xf32>
    %146 = arith.subf %145, %139 : vector<4x32xf32>
    %147 = arith.mulf %146, %144 : vector<4x32xf32>
    %148 = arith.mulf %139, %120 : vector<4x32xf32>
    %149 = arith.addf %147, %148 : vector<4x32xf32>
    %c16_42 = arith.constant 16 : index
    %c0_43 = arith.constant 0 : index
    %150 = vector.load %arg12[%c16_42, %c0_43] : memref<28x32xf32, #tpu.memory_space<vmem>>, vector<4x32xf32>
    tpu.vector_store %arg12[%c16_42, %c0_43], %149 {strides = array<i32>} : memref<28x32xf32, #tpu.memory_space<vmem>>, vector<4x32xf32>,
    %c20 = arith.constant 20 : index
    %c0_44 = arith.constant 0 : index
    %151 = vector.load %arg11[%c20, %c0_44] : memref<28x96xf32, #tpu.memory_space<vmem>>, vector<4x96xf32>
    %cst_45 = arith.constant dense<0.000000e+00> : vector<4x96xf32>
    %152 = tpu.matmul %149, %4, %cst_45 {dimension_numbers = #tpu.dot_dimension_numbers<[1], [0], [0], [1], [0, 0, 1, 1], [], []>} : vector<4x32xf32>, vector<32x96xf32>, vector<4x96xf32> -> vector<4x96xf32>
    %153 = vector.extract_strided_slice %151 {offsets = [0, 0], sizes = [4, 32], strides = [1, 1]} : vector<4x96xf32> to vector<4x32xf32>
    %154 = vector.extract_strided_slice %152 {offsets = [0, 0], sizes = [4, 32], strides = [1, 1]} : vector<4x96xf32> to vector<4x32xf32>
    %155 = arith.addf %153, %154 : vector<4x32xf32>
    %156 = arith.negf %155 : vector<4x32xf32>
    %157 = math.exp %156 : vector<4x32xf32>
    %cst_46 = arith.constant 1.000000e+00 : f32
    %158 = vector.broadcast %cst_46 : f32 to vector<4x32xf32>
    %159 = arith.addf %158, %157 : vector<4x32xf32>
    %160 = arith.divf %158, %159 : vector<4x32xf32>
    %161 = vector.extract_strided_slice %151 {offsets = [0, 32], sizes = [4, 32], strides = [1, 1]} : vector<4x96xf32> to vector<4x32xf32>
    %162 = vector.extract_strided_slice %152 {offsets = [0, 32], sizes = [4, 32], strides = [1, 1]} : vector<4x96xf32> to vector<4x32xf32>
    %163 = arith.addf %161, %162 : vector<4x32xf32>
    %164 = arith.negf %163 : vector<4x32xf32>
    %165 = math.exp %164 : vector<4x32xf32>
    %cst_47 = arith.constant 1.000000e+00 : f32
    %166 = vector.broadcast %cst_47 : f32 to vector<4x32xf32>
    %167 = arith.addf %166, %165 : vector<4x32xf32>
    %168 = arith.divf %166, %167 : vector<4x32xf32>
    %169 = vector.extract_strided_slice %151 {offsets = [0, 64], sizes = [4, 32], strides = [1, 1]} : vector<4x96xf32> to vector<4x32xf32>
    %170 = vector.extract_strided_slice %152 {offsets = [0, 64], sizes = [4, 32], strides = [1, 1]} : vector<4x96xf32> to vector<4x32xf32>
    %171 = arith.mulf %160, %170 : vector<4x32xf32>
    %172 = arith.addf %169, %171 : vector<4x32xf32>
    %173 = math.tanh %172 : vector<4x32xf32>
    %cst_48 = arith.constant 1.000000e+00 : f32
    %174 = vector.broadcast %cst_48 : f32 to vector<4x32xf32>
    %175 = arith.subf %174, %168 : vector<4x32xf32>
    %176 = arith.mulf %175, %173 : vector<4x32xf32>
    %177 = arith.mulf %168, %149 : vector<4x32xf32>
    %178 = arith.addf %176, %177 : vector<4x32xf32>
    %c20_49 = arith.constant 20 : index
    %c0_50 = arith.constant 0 : index
    %179 = vector.load %arg12[%c20_49, %c0_50] : memref<28x32xf32, #tpu.memory_space<vmem>>, vector<4x32xf32>
    tpu.vector_store %arg12[%c20_49, %c0_50], %178 {strides = array<i32>} : memref<28x32xf32, #tpu.memory_space<vmem>>, vector<4x32xf32>,
    %c24 = arith.constant 24 : index
    %c0_51 = arith.constant 0 : index
    %180 = vector.load %arg11[%c24, %c0_51] : memref<28x96xf32, #tpu.memory_space<vmem>>, vector<4x96xf32>
    %cst_52 = arith.constant dense<0.000000e+00> : vector<4x96xf32>
    %181 = tpu.matmul %178, %4, %cst_52 {dimension_numbers = #tpu.dot_dimension_numbers<[1], [0], [0], [1], [0, 0, 1, 1], [], []>} : vector<4x32xf32>, vector<32x96xf32>, vector<4x96xf32> -> vector<4x96xf32>
    %182 = vector.extract_strided_slice %180 {offsets = [0, 0], sizes = [4, 32], strides = [1, 1]} : vector<4x96xf32> to vector<4x32xf32>
    %183 = vector.extract_strided_slice %181 {offsets = [0, 0], sizes = [4, 32], strides = [1, 1]} : vector<4x96xf32> to vector<4x32xf32>
    %184 = arith.addf %182, %183 : vector<4x32xf32>
    %185 = arith.negf %184 : vector<4x32xf32>
    %186 = math.exp %185 : vector<4x32xf32>
    %cst_53 = arith.constant 1.000000e+00 : f32
    %187 = vector.broadcast %cst_53 : f32 to vector<4x32xf32>
    %188 = arith.addf %187, %186 : vector<4x32xf32>
    %189 = arith.divf %187, %188 : vector<4x32xf32>
    %190 = vector.extract_strided_slice %180 {offsets = [0, 32], sizes = [4, 32], strides = [1, 1]} : vector<4x96xf32> to vector<4x32xf32>
    %191 = vector.extract_strided_slice %181 {offsets = [0, 32], sizes = [4, 32], strides = [1, 1]} : vector<4x96xf32> to vector<4x32xf32>
    %192 = arith.addf %190, %191 : vector<4x32xf32>
    %193 = arith.negf %192 : vector<4x32xf32>
    %194 = math.exp %193 : vector<4x32xf32>
    %cst_54 = arith.constant 1.000000e+00 : f32
    %195 = vector.broadcast %cst_54 : f32 to vector<4x32xf32>
    %196 = arith.addf %195, %194 : vector<4x32xf32>
    %197 = arith.divf %195, %196 : vector<4x32xf32>
    %198 = vector.extract_strided_slice %180 {offsets = [0, 64], sizes = [4, 32], strides = [1, 1]} : vector<4x96xf32> to vector<4x32xf32>
    %199 = vector.extract_strided_slice %181 {offsets = [0, 64], sizes = [4, 32], strides = [1, 1]} : vector<4x96xf32> to vector<4x32xf32>
    %200 = arith.mulf %189, %199 : vector<4x32xf32>
    %201 = arith.addf %198, %200 : vector<4x32xf32>
    %202 = math.tanh %201 : vector<4x32xf32>
    %cst_55 = arith.constant 1.000000e+00 : f32
    %203 = vector.broadcast %cst_55 : f32 to vector<4x32xf32>
    %204 = arith.subf %203, %197 : vector<4x32xf32>
    %205 = arith.mulf %204, %202 : vector<4x32xf32>
    %206 = arith.mulf %197, %178 : vector<4x32xf32>
    %207 = arith.addf %205, %206 : vector<4x32xf32>
    %c24_56 = arith.constant 24 : index
    %c0_57 = arith.constant 0 : index
    %208 = vector.load %arg12[%c24_56, %c0_57] : memref<28x32xf32, #tpu.memory_space<vmem>>, vector<4x32xf32>
    tpu.vector_store %arg12[%c24_56, %c0_57], %207 {strides = array<i32>} : memref<28x32xf32, #tpu.memory_space<vmem>>, vector<4x32xf32>,
    %c0_58 = arith.constant 0 : index
    %c0_59 = arith.constant 0 : index
    %209 = vector.load %arg12[%c0_58, %c0_59] : memref<28x32xf32, #tpu.memory_space<vmem>>, vector<28x32xf32>
    %c0_60 = arith.constant 0 : index
    %c0_61 = arith.constant 0 : index
    %210 = vector.load %arg4[%c0_60, %c0_61] : memref<32x32xf32, #tpu.memory_space<vmem>>, vector<32x32xf32>
    %cst_62 = arith.constant dense<0.000000e+00> : vector<28x32xf32>
    %211 = tpu.matmul %209, %210, %cst_62 {dimension_numbers = #tpu.dot_dimension_numbers<[1], [0], [0], [1], [0, 0, 1, 1], [], []>} : vector<28x32xf32>, vector<32x32xf32>, vector<28x32xf32> -> vector<28x32xf32>
    %c0_63 = arith.constant 0 : index
    %c0_64 = arith.constant 0 : index
    %212 = vector.load %arg5[%c0_63, %c0_64] : memref<1x32xf32, #tpu.memory_space<vmem>>, vector<1x32xf32>
    %213 = vector.broadcast %212 : vector<1x32xf32> to vector<28x32xf32>
    %214 = arith.addf %211, %213 : vector<28x32xf32>
    %cst_65 = arith.constant 0.000000e+00 : f32
    %215 = vector.broadcast %cst_65 : f32 to vector<28x32xf32>
    %216 = arith.maximumf %214, %215 : vector<28x32xf32>
    %c0_66 = arith.constant 0 : index
    %c0_67 = arith.constant 0 : index
    %217 = vector.load %arg6[%c0_66, %c0_67] : memref<32x16xf32, #tpu.memory_space<vmem>>, vector<32x16xf32>
    %cst_68 = arith.constant dense<0.000000e+00> : vector<28x16xf32>
    %218 = tpu.matmul %216, %217, %cst_68 {dimension_numbers = #tpu.dot_dimension_numbers<[1], [0], [0], [1], [0, 0, 1, 1], [], []>} : vector<28x32xf32>, vector<32x16xf32>, vector<28x16xf32> -> vector<28x16xf32>
    %c0_69 = arith.constant 0 : index
    %c0_70 = arith.constant 0 : index
    %219 = vector.load %arg7[%c0_69, %c0_70] : memref<1x16xf32, #tpu.memory_space<vmem>>, vector<1x16xf32>
    %220 = vector.broadcast %219 : vector<1x16xf32> to vector<28x16xf32>
    %221 = arith.addf %218, %220 : vector<28x16xf32>
    %c0_71 = arith.constant 0 : index
    %c0_72 = arith.constant 0 : index
    %222 = vector.load %arg10[%c0_71, %c0_72] : memref<28x16xf32, #tpu.memory_space<vmem>>, vector<28x16xf32>
    tpu.vector_store %arg10[%c0_71, %c0_72], %221 {strides = array<i32>} : memref<28x16xf32, #tpu.memory_space<vmem>>, vector<28x16xf32>,
    %223 = vector.extract_strided_slice %221 {offsets = [0, 0], sizes = [28, 8], strides = [1, 1]} : vector<28x16xf32> to vector<28x8xf32>
    %224 = vector.extract_strided_slice %221 {offsets = [0, 8], sizes = [28, 8], strides = [1, 1]} : vector<28x16xf32> to vector<28x8xf32>
    %c4_73 = arith.constant 4 : index
    %c0_74 = arith.constant 0 : index
    %225 = vector.load %arg1[%c4_73, %c0_74] : memref<32x8xf32, #tpu.memory_space<vmem>>, vector<28x8xf32>
    %226 = arith.subf %223, %225 : vector<28x8xf32>
    %227 = math.absf %224 : vector<28x8xf32>
    %cst_75 = arith.constant 9.99999974E-6 : f32
    %228 = vector.broadcast %cst_75 : f32 to vector<28x8xf32>
    %229 = arith.addf %227, %228 : vector<28x8xf32>
    %230 = math.log %229 : vector<28x8xf32>
    %cst_76 = arith.constant 5.000000e-01 : f32
    %231 = vector.broadcast %cst_76 : f32 to vector<28x8xf32>
    %232 = arith.mulf %231, %230 : vector<28x8xf32>
    %cst_77 = arith.constant -4.60517025 : f32
    %233 = vector.broadcast %cst_77 : f32 to vector<28x8xf32>
    %234 = arith.subf %233, %232 : vector<28x8xf32>
    %235 = arith.mulf %226, %226 : vector<28x8xf32>
    %236 = arith.addf %229, %235 : vector<28x8xf32>
    %cst_78 = arith.constant 5.000000e+03 : f32
    %237 = vector.broadcast %cst_78 : f32 to vector<28x8xf32>
    %238 = arith.mulf %236, %237 : vector<28x8xf32>
    %239 = arith.addf %234, %238 : vector<28x8xf32>
    %cst_79 = arith.constant 5.000000e-01 : f32
    %240 = vector.broadcast %cst_79 : f32 to vector<28x8xf32>
    %241 = arith.subf %239, %240 : vector<28x8xf32>
    %242 = vector.shape_cast %241 : vector<28x8xf32> to vector<1x28x8xf32>
    %cst_80 = arith.constant dense<0.000000e+00> : vector<1xf32>
    %243 = vector.multi_reduction <add>, %242, %cst_80 [1, 2] : vector<1x28x8xf32> to vector<1xf32>
    %244 = vector.shape_cast %243 : vector<1xf32> to vector<1x1x1xf32>
    %245 = vector.extract %244[0, 0, 0] : f32 from vector<1x1x1xf32>
    %246 = vector.broadcast %245 : f32 to vector<1x1xf32>
    %c0_81 = arith.constant 0 : index
    %c0_82 = arith.constant 0 : index
    %247 = vector.load %arg8[%c0_81, %c0_82] : memref<1x1xf32, #tpu.memory_space<vmem>>, vector<1x1xf32>
    tpu.vector_store %arg8[%c0_81, %c0_82], %246 {strides = array<i32>} : memref<1x1xf32, #tpu.memory_space<vmem>>, vector<1x1xf32>,
    %248 = arith.mulf %226, %226 : vector<28x8xf32>
    %249 = vector.shape_cast %248 : vector<28x8xf32> to vector<1x28x8xf32>
    %cst_83 = arith.constant dense<0.000000e+00> : vector<1xf32>
    %250 = vector.multi_reduction <add>, %249, %cst_83 [1, 2] : vector<1x28x8xf32> to vector<1xf32>
    %251 = vector.shape_cast %250 : vector<1xf32> to vector<1x1x1xf32>
    %252 = vector.extract %251[0, 0, 0] : f32 from vector<1x1x1xf32>
    %253 = vector.broadcast %252 : f32 to vector<1x1xf32>
    %c0_84 = arith.constant 0 : index
    %c0_85 = arith.constant 0 : index
    %254 = vector.load %arg9[%c0_84, %c0_85] : memref<1x1xf32, #tpu.memory_space<vmem>>, vector<1x1xf32>
    tpu.vector_store %arg9[%c0_84, %c0_85], %253 {strides = array<i32>} : memref<1x1xf32, #tpu.memory_space<vmem>>, vector<1x1xf32>,
    return
  }
  func.func @transform_0(%arg0: i32) -> (i32, i32) {
    %c0_i32 = arith.constant 0 : i32
    %c0_i32_0 = arith.constant 0 : i32
    %c0_i32_1 = arith.constant 0 : i32
    return %c0_i32, %c0_i32_0 : i32, i32
  }
  func.func @transform_1(%arg0: i32) -> (i32, i32) {
    %c0_i32 = arith.constant 0 : i32
    %c0_i32_0 = arith.constant 0 : i32
    %c0_i32_1 = arith.constant 0 : i32
    return %c0_i32, %c0_i32_0 : i32, i32
  }
  func.func @transform_2(%arg0: i32) -> (i32, i32) {
    %c0_i32 = arith.constant 0 : i32
    %c0_i32_0 = arith.constant 0 : i32
    %c0_i32_1 = arith.constant 0 : i32
    return %c0_i32, %c0_i32_0 : i32, i32
  }
  func.func @transform_3(%arg0: i32) -> (i32, i32) {
    %c0_i32 = arith.constant 0 : i32
    %c0_i32_0 = arith.constant 0 : i32
    %c0_i32_1 = arith.constant 0 : i32
    return %c0_i32, %c0_i32_0 : i32, i32
  }
  func.func @transform_4(%arg0: i32) -> (i32, i32) {
    %c0_i32 = arith.constant 0 : i32
    %c0_i32_0 = arith.constant 0 : i32
    %c0_i32_1 = arith.constant 0 : i32
    return %c0_i32, %c0_i32_0 : i32, i32
  }
  func.func @transform_5(%arg0: i32) -> (i32, i32) {
    %c0_i32 = arith.constant 0 : i32
    %c0_i32_0 = arith.constant 0 : i32
    %c0_i32_1 = arith.constant 0 : i32
    return %c0_i32, %c0_i32_0 : i32, i32
  }
  func.func @transform_6(%arg0: i32) -> (i32, i32) {
    %c0_i32 = arith.constant 0 : i32
    %c0_i32_0 = arith.constant 0 : i32
    %c0_i32_1 = arith.constant 0 : i32
    return %c0_i32, %c0_i32_0 : i32, i32
  }
  func.func @transform_7(%arg0: i32) -> (i32, i32) {
    %c0_i32 = arith.constant 0 : i32
    %c0_i32_0 = arith.constant 0 : i32
    %c0_i32_1 = arith.constant 0 : i32
    return %c0_i32, %c0_i32_0 : i32, i32
  }
  func.func @transform_8(%arg0: i32) -> (i32, i32) {
    %c0_i32 = arith.constant 0 : i32
    %c0_i32_0 = arith.constant 0 : i32
    %c0_i32_1 = arith.constant 0 : i32
    return %c0_i32, %c0_i32_0 : i32, i32
  }
  func.func @transform_9(%arg0: i32) -> (i32, i32) {
    %c0_i32 = arith.constant 0 : i32
    %c0_i32_0 = arith.constant 0 : i32
    %c0_i32_1 = arith.constant 0 : i32
    return %c0_i32, %c0_i32_0 : i32, i32
  }
}

</mosaic_0001>

<bundles_post_ra>
// kernel: tpu_custom_call.1
= control target key start
LH: loop header
LB: loop body
LE: loop exit
PB: predicated region body
PF: predicated region fallthrough
CT: control target
= control target key end

     0   :  { %15 = vsyncpa [#allocation5], 0  ;;  %vm36_vm0 = vcmask 64512   ;;  %s1263_s0 = inlined_call_operand.vmem [shape: f32[32,8], index: 0, kind: input, shape index: {}]   ;;  %s1264_s1 = inlined_call_operand.vmem [shape: f32[8,96], index: 1, kind: input, shape index: {}]   ;;  %s1265_s2 = inlined_call_operand.vmem [shape: f32[32,96], index: 2, kind: input, shape index: {}]   ;;  %s1266_s3 = inlined_call_operand.vmem [shape: f32[32,32], index: 3, kind: input, shape index: {}]   ;;  %s1267_s4 = inlined_call_operand.vmem [shape: f32[1,32], index: 4, kind: input, shape index: {}]   ;;  %s1268_s5 = inlined_call_operand.vmem [shape: f32[32,16], index: 5, kind: input, shape index: {}]   ;;  %s1269_s6 = inlined_call_operand.vmem [shape: f32[1,16], index: 6, kind: input, shape index: {}]   ;;  %s1270_s7 = inlined_call_operand.hbm [shape: f32[1,1], index: 7, kind: output, shape index: {0}]   ;;  %s1271_s8 = inlined_call_operand.hbm [shape: f32[1,1], index: 8, kind: output, shape index: {1}]   ;;  %s1272_s9 = inlined_call_operand.vmem [shape: f32[28,16], index: 9, kind: output, shape index: {2}]  }
   0x1   :  { %v35_v0 = vld [vmem:[%s1264_s1] sm:$0xff]  ;;  %v1037_v1 = vld [vmem:[%s1265_s2 + $0x18] sm:$0xff]  ;;  %v1046_v3 = vld [vmem:[%s1265_s2 + $0x10] sm:$0xff] }
   0x2   :  { %v31_v2 = vld [vmem:[%s1263_s0] sm:$0xff]  ;;  %64 = vmatpush.msra.mxu0 %v35_v0  ;;  %105 = vmatpush.msra.mxu1 %v1037_v1  ;;  %v1051_v4 = vld [vmem:[%s1265_s2 + $0x8] sm:$0xff] }
   0x3   :  { %830 = vmatmul.msk.f32.vlgmr.msra.gmra.mxu0 %vm36_vm0, %v31_v2  ;;  %374 = vmatpush.msra.mxu2 %v1037_v1 }
   0x4   :  { %16 = vsyncpa [#allocation7], 0  ;;  %106 = vmatpush.msra.mxu1 %v1046_v3  ;;  %240 = vmatpush.msrb.mxu0 %v1037_v1  ;;  %v1060_v5 = vld [vmem:[%s1265_s2] sm:$0xff]  ;;  %v974_v6 = vmov 0.0   ;;  %vm78_vm1 = vcmask 785408   ;;  %s975_s2 = smov 64  }
   0x5   :  { %375 = vmatpush.msra.mxu2 %v1046_v3  ;;  %441 = vmatpush.msra.mxu3 %v1037_v1  ;;  %s976_s20 = smov 96   ;;  %vm156_vm6 = vcmask 257024   ;;  %vm89_vm7 = vcmask 261120   ;;  %v32_v56 = vld [vmem:[%s1263_s0 + $0x8] sm:$0xff]  ;;  %v33_v57 = vld [vmem:[%s1263_s0 + $0x10] sm:$0xff]  ;;  %vm82_vm12 = vcmask 781312  }
   0x6   :  { %107 = vmatpush.msra.mxu1 %v1051_v4  ;;  %241 = vmatpush.msrb.mxu0 %v1046_v3  ;;  %v34_v58 = vld [vmem:[%s1263_s0 + $0x18] sm:$0xf]  ;;  %s977_s28 = smov 8   ;;  %s978_s11 = smov 120  }
   0x7   :  { %376 = vmatpush.msra.mxu2 %v1051_v4  ;;  %442 = vmatpush.msra.mxu3 %v1046_v3  ;;  %s801_s1 = sshll.u32 %s1270_s7, 4  ;;  %s980_s18 = smov [#allocation6]   ;;  %s802_s1 = int_to_ptr.hbm [resolvable:$true] %s801_s1 }
   0x8   :  { %108 = vmatpush.msra.mxu1 %v1060_v5  ;;  %242 = vmatpush.msrb.mxu0 %v1051_v4  ;;  %s810_s19 = sshll.u32 %s980_s18, 4  ;;  %s811_s19 = int_to_ptr.vmem [resolvable:$true] %s810_s19 }
   0x9   :  { %109 = vmatmul.f32.vlgmr.msra.gmra.mxu1 %v974_v6  ;;  %377 = vmatpush.msra.mxu2 %v1060_v5 }
   0xa   :  { %173 = vmatpush.msrb.mxu1 %v1037_v1  ;;  %243 = vmatpush.msrb.mxu0 %v1060_v5 }
   0xb   :  { %443 = vmatpush.msra.mxu3 %v1051_v4  ;;  %831 = vmatmul.msk.f32.gmra.mxu0 %vm36_vm0, %v32_v56 }
   0xc   :  { %174 = vmatpush.msrb.mxu1 %v1046_v3 }
   0xd   :  { %444 = vmatpush.msra.mxu3 %v1060_v5 }
   0xe   :  { %175 = vmatpush.msrb.mxu1 %v1051_v4 }
  0x10   :  { %176 = vmatpush.msrb.mxu1 %v1060_v5 }
  0x12   :  { %307 = vmatpush.msra.mxu1 %v1037_v1 }
  0x13   :  { %832 = vmatmul.msk.f32.gmra.mxu0 %vm36_vm0, %v33_v57  ;;  %v567_v57 = vld [vmem:[%s1266_s3 + $0x18] sm:$0xff] }
  0x14   :  { %308 = vmatpush.msra.mxu1 %v1046_v3  ;;  %596 = vmatpush.msrb.mxu2 %v567_v57 }
  0x16   :  { %309 = vmatpush.msra.mxu1 %v1051_v4 }
  0x18   :  { %310 = vmatpush.msra.mxu1 %v1060_v5 }
  0x1b   :  { %833 = vmatmul.msk.f32.gmra.mxu0 %vm36_vm0, %v34_v58  ;;  %v566_v58 = vld [vmem:[%s1266_s3 + $0x10] sm:$0xff] }
  0x1c   :  { %597 = vmatpush.msrb.mxu2 %v566_v58 }
  0x80   :  { %v66_v7 = vpop.f32.mrf.mxu0 }
  0x81   :  { %79 = vst.msk [vmem:[#allocation2] sm:$0xff] %vm78_vm1, %v66_v7 }
  0x86   :  { %v110_v8 = vpop.f32.mrf.mxu1 }
  0x87   :  { %134 = vrot.lane.b32.xlu0 %v110_v8, %s975_s2 }
  0x88   :  { %v88_v9 = vld [vmem:[#allocation2] sm:$0xf]  ;;  %v158_v36 = vld [vmem:[#allocation2 + $0x4] sm:$0xf]  ;;  %v69_v0 = vpop.f32.mrf.mxu0 }
  0x89   :  { %v113_v10 = vadd.f32 %v110_v8, %v88_v9  ;;  %80 = vst.msk [vmem:[#allocation2 + $0x8] sm:$0xff] %vm78_vm1, %v69_v0 }
  0x8b   :  { %v834_v11 = vmul.f32 -1.442695, %v113_v10 }
  0x8d   :  { %872 = vpow2.f32 %v834_v11 }
  0x93   :  { %v873_v12 = vpop.eup %872 }
  0x94   :  { %v117_v13 = vadd.f32 1.0, %v873_v12 }
  0x96   :  { %874 = vrcp.f32 %v117_v13  ;;  %v129_v19 = vand.u32 2147483648, %v117_v13  ;;  %vm123_vm3 = vweird.f32 %v117_v13  ;;  %v127_v20 = vand.u32 2147483647, %v117_v13 }
  0x98   :  { %v130_v22 = vor.u32 1.1754944e-38, %v129_v19  ;;  %vm128_vm5 = vcmp.eq.f32.partialorder %v127_v20, 8.507059e+37 }
  0x9c   :  { %v875_v14 = vpop.eup %874 }
  0x9d   :  { %v119_v15 = vmul.f32 %v875_v14, %v117_v13  ;;  %vm124_vm2 = vweird.f32 %v875_v14 }
  0x9e   :  { %vm125_vm4 = vmor %vm123_vm3, %vm124_vm2 }
  0x9f   :  { %v120_v16 = vsub.f32 1.0, %v119_v15 }
  0xa1   :  { %v121_v17 = vmul.f32 %v875_v14, %v120_v16 }
  0xa3   :  { %v122_v18 = vadd.f32 %v875_v14, %v121_v17 }
  0xa5   :  { %v126_v21 = vsel %vm125_vm4, %v875_v14, %v122_v18 }
  0xa6   :  { %v131_v24 = vsel %vm128_vm5, %v130_v22, %v126_v21 }
  0xa7   :  { %v144_v29 = vsub.f32 1.0, %v131_v24  ;;  %v150_v31 = vmul.f32 0.0, %v131_v24 }
  0xf9   :  { %v135_v23 = vpop.permute.xlu0 %134 }
  0xfa   :  { %v137_v25 = vmul.f32 %v135_v23, %v131_v24 }
  0xfc   :  { %139 = vrot.lane.b32.xlu0 %v137_v25, %s975_s2 }
 0x16e   :  { %v140_v26 = vpop.permute.xlu0 %139 }
 0x16f   :  { %v142_v27 = vadd.f32 %v140_v26, %v88_v9 }
 0x171   :  { %876 = vtanh.f32 %v142_v27 }
 0x177   :  { %v877_v28 = vpop.eup %876 }
 0x178   :  { %146 = vrot.lane.b32.xlu1 %v877_v28, %s976_s20 }
 0x1ea   :  { %v147_v30 = vpop.permute.xlu1 %146 }
 0x1eb   :  { %v149_v32 = vmul.f32 %v147_v30, %v144_v29 }
 0x1ed   :  { %v151_v33 = vadd.f32 %v150_v31, %v149_v32  ;;  %v292_v32 = vld [vmem:[#allocation2 + $0xc] sm:$0xf] }
 0x1ef   :  { %153 = vrot.lane.b32.xlu1 %v151_v33, %s976_s20 }
 0x261   :  { %v154_v34 = vpop.permute.xlu1 %153 }
 0x262   :  { %157 = vst.msk [vmem:[#allocation3] sm:$0xf] %vm156_vm6, %v154_v34  ;;  %835 = vmatmul.msk.f32.vlgmr.msrb.gmra.mxu1 %vm89_vm7, %v154_v34 }
 0x263   :  { %508 = vmatpush.msrb.mxu1 %v1037_v1  ;;  %v72_v1 = vpop.f32.mrf.mxu0 }
 0x264   :  { %81 = vst.msk [vmem:[#allocation2 + $0x10] sm:$0xff] %vm78_vm1, %v72_v1 }
 0x265   :  { %509 = vmatpush.msrb.mxu1 %v1046_v3 }
 0x267   :  { %510 = vmatpush.msrb.mxu1 %v1051_v4 }
 0x269   :  { %511 = vmatpush.msrb.mxu1 %v1060_v5  ;;  %v225_v5 = vld [vmem:[#allocation2 + $0x8] sm:$0xf] }
 0x26b   :  { %v75_v2 = vpop.f32.mrf.mxu0  ;;  %v359_v1 = vld [vmem:[#allocation2 + $0x10] sm:$0xf] }
 0x26c   :  { %83 = vst.msk [vmem:[#allocation2 + $0x18] sm:$0xf] %vm82_vm12, %v75_v2  ;;  %vm666_vm12 = vcmask 130048  }
 0x2df   :  { %v178_v35 = vpop.f32.mrf.mxu1 }
 0x2e0   :  { %202 = vrot.lane.b32.xlu2 %v178_v35, %s975_s2  ;;  %v181_v37 = vadd.f32 %v178_v35, %v158_v36 }
 0x2e2   :  { %v836_v38 = vmul.f32 -1.442695, %v181_v37 }
 0x2e4   :  { %878 = vpow2.f32 %v836_v38 }
 0x2ea   :  { %v879_v39 = vpop.eup %878 }
 0x2eb   :  { %v185_v40 = vadd.f32 1.0, %v879_v39 }
 0x2ed   :  { %880 = vrcp.f32 %v185_v40  ;;  %v197_v46 = vand.u32 2147483648, %v185_v40  ;;  %vm191_vm9 = vweird.f32 %v185_v40  ;;  %v195_v47 = vand.u32 2147483647, %v185_v40 }
 0x2ef   :  { %v198_v49 = vor.u32 1.1754944e-38, %v197_v46  ;;  %vm196_vm11 = vcmp.eq.f32.partialorder %v195_v47, 8.507059e+37 }
 0x2f3   :  { %v881_v41 = vpop.eup %880 }
 0x2f4   :  { %v187_v42 = vmul.f32 %v881_v41, %v185_v40  ;;  %vm192_vm8 = vweird.f32 %v881_v41 }
 0x2f5   :  { %vm193_vm10 = vmor %vm191_vm9, %vm192_vm8 }
 0x2f6   :  { %v188_v43 = vsub.f32 1.0, %v187_v42 }
 0x2f8   :  { %v189_v44 = vmul.f32 %v881_v41, %v188_v43 }
 0x2fa   :  { %v190_v45 = vadd.f32 %v881_v41, %v189_v44 }
 0x2fc   :  { %v194_v48 = vsel %vm193_vm10, %v881_v41, %v190_v45 }
 0x2fd   :  { %v199_v51 = vsel %vm196_vm11, %v198_v49, %v194_v48 }
 0x2fe   :  { %v212_v59 = vsub.f32 1.0, %v199_v51  ;;  %v218_v61 = vmul.f32 %v199_v51, %v151_v33 }
 0x33a   :  { %v203_v50 = vpop.permute.xlu2 %202 }
 0x33b   :  { %v205_v52 = vmul.f32 %v203_v50, %v199_v51 }
 0x33d   :  { %207 = vrot.lane.b32.xlu2 %v205_v52, %s975_s2 }
 0x397   :  { %v208_v53 = vpop.permute.xlu2 %207 }
 0x398   :  { %v210_v54 = vadd.f32 %v208_v53, %v158_v36 }
 0x39a   :  { %882 = vtanh.f32 %v210_v54 }
 0x3a0   :  { %v883_v55 = vpop.eup %882 }
 0x3a1   :  { %214 = vrot.lane.b32.xlu0 %v883_v55, %s976_s20 }
 0x413   :  { %v215_v60 = vpop.permute.xlu0 %214 }
 0x414   :  { %v217_v62 = vmul.f32 %v215_v60, %v212_v59  ;;  %v565_v59 = vld [vmem:[%s1266_s3 + $0x8] sm:$0xff]  ;;  %v564_v60 = vld [vmem:[%s1266_s3] sm:$0xff] }
 0x415   :  { %598 = vmatpush.msrb.mxu2 %v565_v59 }
 0x416   :  { %v219_v63 = vadd.f32 %v218_v61, %v217_v62 }
 0x417   :  { %599 = vmatpush.msrb.mxu2 %v564_v60 }
 0x418   :  { %221 = vrot.lane.b32.xlu1 %v219_v63, %s976_s20 }
 0x48a   :  { %v222_v3 = vpop.permute.xlu1 %221 }
 0x48b   :  { %224 = vst.msk [vmem:[#allocation3 + $0x4] sm:$0xf] %vm156_vm6, %v222_v3  ;;  %837 = vmatmul.msk.f32.vlgmr.msrb.gmra.mxu0 %vm89_vm7, %v222_v3 }
 0x492   :  { %v560_v62 = vld [vmem:[#allocation3] sm:$0xff] }
 0x508   :  { %v245_v4 = vpop.f32.mrf.mxu0 }
 0x509   :  { %269 = vrot.lane.b32.xlu2 %v245_v4, %s975_s2  ;;  %v248_v6 = vadd.f32 %v245_v4, %v225_v5 }
 0x50b   :  { %v838_v7 = vmul.f32 -1.442695, %v248_v6 }
 0x50d   :  { %884 = vpow2.f32 %v838_v7 }
 0x513   :  { %v885_v8 = vpop.eup %884 }
 0x514   :  { %v252_v9 = vadd.f32 1.0, %v885_v8 }
 0x516   :  { %886 = vrcp.f32 %v252_v9  ;;  %v264_v15 = vand.u32 2147483648, %v252_v9  ;;  %vm258_vm14 = vweird.f32 %v252_v9  ;;  %v262_v16 = vand.u32 2147483647, %v252_v9 }
 0x518   :  { %v265_v18 = vor.u32 1.1754944e-38, %v264_v15  ;;  %vm263_vm1 = vcmp.eq.f32.partialorder %v262_v16, 8.507059e+37 }
 0x51c   :  { %v887_v10 = vpop.eup %886 }
 0x51d   :  { %v254_v11 = vmul.f32 %v887_v10, %v252_v9  ;;  %vm259_vm13 = vweird.f32 %v887_v10 }
 0x51e   :  { %vm260_vm15 = vmor %vm258_vm14, %vm259_vm13 }
 0x51f   :  { %v255_v12 = vsub.f32 1.0, %v254_v11 }
 0x521   :  { %v256_v13 = vmul.f32 %v887_v10, %v255_v12 }
 0x523   :  { %v257_v14 = vadd.f32 %v887_v10, %v256_v13 }
 0x525   :  { %v261_v17 = vsel %vm260_vm15, %v887_v10, %v257_v14 }
 0x526   :  { %v266_v20 = vsel %vm263_vm1, %v265_v18, %v261_v17 }
 0x527   :  { %v279_v25 = vsub.f32 1.0, %v266_v20  ;;  %v285_v27 = vmul.f32 %v266_v20, %v219_v63 }
 0x563   :  { %v270_v19 = vpop.permute.xlu2 %269 }
 0x564   :  { %v272_v21 = vmul.f32 %v270_v19, %v266_v20 }
 0x566   :  { %274 = vrot.lane.b32.xlu0 %v272_v21, %s975_s2 }
 0x5d8   :  { %v275_v22 = vpop.permute.xlu0 %274 }
 0x5d9   :  { %v277_v23 = vadd.f32 %v275_v22, %v225_v5 }
 0x5db   :  { %888 = vtanh.f32 %v277_v23 }
 0x5e1   :  { %v889_v24 = vpop.eup %888 }
 0x5e2   :  { %281 = vrot.lane.b32.xlu1 %v889_v24, %s976_s20 }
 0x654   :  { %v282_v26 = vpop.permute.xlu1 %281 }
 0x655   :  { %v284_v28 = vmul.f32 %v282_v26, %v279_v25  ;;  %v620_v26 = vld [vmem:[%s1268_s5 + $0x18] sm:$0xff] }
 0x656   :  { %649 = vmatpush.msrb.mxu3 %v620_v26 }
 0x657   :  { %v286_v29 = vadd.f32 %v285_v27, %v284_v28  ;;  %v619_v27 = vld [vmem:[%s1268_s5 + $0x10] sm:$0xff]  ;;  %v618_v28 = vld [vmem:[%s1268_s5 + $0x8] sm:$0xff] }
 0x658   :  { %650 = vmatpush.msrb.mxu3 %v619_v27 }
 0x659   :  { %288 = vrot.lane.b32.xlu2 %v286_v29, %s976_s20 }
 0x65a   :  { %651 = vmatpush.msrb.mxu3 %v618_v28  ;;  %v672_v28 = vld [vmem:[%s1263_s0 + $0x4] sm:$0xff] }
 0x6b3   :  { %v289_v30 = vpop.permute.xlu2 %288 }
 0x6b4   :  { %291 = vst.msk [vmem:[#allocation3 + $0x8] sm:$0xf] %vm156_vm6, %v289_v30  ;;  %839 = vmatmul.msk.f32.vlgmr.msra.gmra.mxu1 %vm89_vm7, %v289_v30 }
 0x731   :  { %v312_v31 = vpop.f32.mrf.mxu1 }
 0x732   :  { %336 = vrot.lane.b32.xlu0 %v312_v31, %s975_s2  ;;  %v315_v33 = vadd.f32 %v312_v31, %v292_v32  ;;  %v1161_v31 = vld [vmem:[%s1267_s4] ss:$0 sm:$0xff]  ;;  %s812_s4 = sshll.u32 %s1271_s8, 4  ;;  %s813_s4 = int_to_ptr.hbm [resolvable:$true] %s812_s4 }
 0x734   :  { %v840_v34 = vmul.f32 -1.442695, %v315_v33 }
 0x736   :  { %890 = vpow2.f32 %v840_v34 }
 0x73c   :  { %v891_v35 = vpop.eup %890 }
 0x73d   :  { %v319_v36 = vadd.f32 1.0, %v891_v35 }
 0x73f   :  { %892 = vrcp.f32 %v319_v36  ;;  %v331_v42 = vand.u32 2147483648, %v319_v36  ;;  %vm325_vm3 = vweird.f32 %v319_v36  ;;  %v329_v43 = vand.u32 2147483647, %v319_v36 }
 0x741   :  { %v332_v45 = vor.u32 1.1754944e-38, %v331_v42  ;;  %vm330_vm5 = vcmp.eq.f32.partialorder %v329_v43, 8.507059e+37 }
 0x745   :  { %v893_v37 = vpop.eup %892 }
 0x746   :  { %v321_v38 = vmul.f32 %v893_v37, %v319_v36  ;;  %vm326_vm2 = vweird.f32 %v893_v37 }
 0x747   :  { %vm327_vm4 = vmor %vm325_vm3, %vm326_vm2 }
 0x748   :  { %v322_v39 = vsub.f32 1.0, %v321_v38 }
 0x74a   :  { %v323_v40 = vmul.f32 %v893_v37, %v322_v39  ;;  %v1173_v39 = vld [vmem:[%s1269_s6] ss:$0 sm:$0xff] }
 0x74c   :  { %v324_v41 = vadd.f32 %v893_v37, %v323_v40 }
 0x74e   :  { %v328_v44 = vsel %vm327_vm4, %v893_v37, %v324_v41 }
 0x74f   :  { %v333_v47 = vsel %vm330_vm5, %v332_v45, %v328_v44  ;;  %v426_v44 = vld [vmem:[#allocation2 + $0x14] sm:$0xf] }
 0x750   :  { %v346_v52 = vsub.f32 1.0, %v333_v47  ;;  %v352_v54 = vmul.f32 %v333_v47, %v286_v29  ;;  %v617_v29 = vld [vmem:[%s1268_s5] sm:$0xff] }
 0x751   :  { %652 = vmatpush.msrb.mxu3 %v617_v29 }
 0x7a4   :  { %v337_v46 = vpop.permute.xlu0 %336 }
 0x7a5   :  { %v339_v48 = vmul.f32 %v337_v46, %v333_v47 }
 0x7a7   :  { %341 = vrot.lane.b32.xlu1 %v339_v48, %s975_s2 }
 0x819   :  { %v342_v49 = vpop.permute.xlu1 %341 }
 0x81a   :  { %v344_v50 = vadd.f32 %v342_v49, %v292_v32 }
 0x81c   :  { %894 = vtanh.f32 %v344_v50 }
 0x822   :  { %v895_v51 = vpop.eup %894 }
 0x823   :  { %348 = vrot.lane.b32.xlu2 %v895_v51, %s976_s20 }
 0x87d   :  { %v349_v53 = vpop.permute.xlu2 %348 }
 0x87e   :  { %v351_v55 = vmul.f32 %v349_v53, %v346_v52 }
 0x880   :  { %v353_v56 = vadd.f32 %v352_v54, %v351_v55 }
 0x882   :  { %355 = vrot.lane.b32.xlu0 %v353_v56, %s976_s20 }
 0x8f4   :  { %v356_v61 = vpop.permute.xlu0 %355 }
 0x8f5   :  { %358 = vst.msk [vmem:[#allocation3 + $0xc] sm:$0xf] %vm156_vm6, %v356_v61  ;;  %841 = vmatmul.msk.f32.vlgmr.msra.gmra.mxu2 %vm89_vm7, %v356_v61 }
 0x8fc   :  { %v561_v63 = vld [vmem:[#allocation3 + $0x8] sm:$0xff] }
 0x8fd   :  { %847 = vmatmul.msk.f32.vlgmr.msrb.gmra.mxu2 %vm89_vm7, %v560_v62 }
 0x905   :  { %848 = vmatmul.msk.f32.gmra.mxu2 %vm89_vm7, %v561_v63 }
 0x978   :  { %v379_v0 = vpop.f32.mrf.mxu2 }
 0x979   :  { %403 = vrot.lane.b32.xlu1 %v379_v0, %s975_s2  ;;  %v382_v2 = vadd.f32 %v379_v0, %v359_v1 }
 0x97b   :  { %v842_v3 = vmul.f32 -1.442695, %v382_v2 }
 0x97d   :  { %896 = vpow2.f32 %v842_v3 }
 0x980   :  { %v601_v30 = vpop.f32.mrf.mxu2 }
 0x981   :  { %v602_v33 = vadd.f32 %v1161_v31, %v601_v30 }
 0x983   :  { %v897_v4 = vpop.eup %896  ;;  %v613_v34 = vmax.f32 %v602_v33, 0.0 }
 0x984   :  { %v386_v5 = vadd.f32 1.0, %v897_v4 }
 0x986   :  { %898 = vrcp.f32 %v386_v5  ;;  %v398_v11 = vand.u32 2147483648, %v386_v5  ;;  %vm392_vm9 = vweird.f32 %v386_v5  ;;  %v396_v12 = vand.u32 2147483647, %v386_v5 }
 0x988   :  { %v399_v14 = vor.u32 1.1754944e-38, %v398_v11  ;;  %vm397_vm11 = vcmp.eq.f32.partialorder %v396_v12, 8.507059e+37  ;;  %v604_v35 = vpop.f32.mrf.mxu2  ;;  %v493_v11 = vld [vmem:[#allocation2 + $0x18] sm:$0xf] }
 0x989   :  { %v605_v36 = vadd.f32 %v1161_v31, %v604_v35 }
 0x98b   :  { %v614_v37 = vmax.f32 %v605_v36, 0.0 }
 0x98c   :  { %v899_v6 = vpop.eup %898 }
 0x98d   :  { %v388_v7 = vmul.f32 %v899_v6, %v386_v5  ;;  %vm393_vm8 = vweird.f32 %v899_v6 }
 0x98e   :  { %vm394_vm10 = vmor %vm392_vm9, %vm393_vm8  ;;  %vm670_vm8 = vcmask 125952  }
 0x98f   :  { %v389_v8 = vsub.f32 1.0, %v388_v7 }
 0x991   :  { %v390_v9 = vmul.f32 %v899_v6, %v389_v8 }
 0x993   :  { %v391_v10 = vadd.f32 %v899_v6, %v390_v9 }
 0x995   :  { %v395_v13 = vsel %vm394_vm10, %v899_v6, %v391_v10 }
 0x996   :  { %v400_v16 = vsel %vm397_vm11, %v399_v14, %v395_v13 }
 0x997   :  { %v413_v21 = vsub.f32 1.0, %v400_v16  ;;  %v419_v23 = vmul.f32 %v400_v16, %v353_v56 }
 0x9eb   :  { %v404_v15 = vpop.permute.xlu1 %403 }
 0x9ec   :  { %v406_v17 = vmul.f32 %v404_v15, %v400_v16 }
 0x9ee   :  { %408 = vrot.lane.b32.xlu2 %v406_v17, %s975_s2 }
 0xa48   :  { %v409_v18 = vpop.permute.xlu2 %408 }
 0xa49   :  { %v411_v19 = vadd.f32 %v409_v18, %v359_v1 }
 0xa4b   :  { %900 = vtanh.f32 %v411_v19 }
 0xa51   :  { %v901_v20 = vpop.eup %900 }
 0xa52   :  { %415 = vrot.lane.b32.xlu0 %v901_v20, %s976_s20 }
 0xac4   :  { %v416_v22 = vpop.permute.xlu0 %415 }
 0xac5   :  { %v418_v24 = vmul.f32 %v416_v22, %v413_v21 }
 0xac7   :  { %v1142_v25 = vadd.f32 %v419_v23, %v418_v24 }
 0xac9   :  { %422 = vrot.lane.b32.xlu1 %v1142_v25, %s976_s20 }
 0xb3b   :  { %v423_v32 = vpop.permute.xlu1 %422 }
 0xb3c   :  { %425 = vst.msk [vmem:[#allocation3 + $0x10] sm:$0xf] %vm156_vm6, %v423_v32  ;;  %843 = vmatmul.msk.f32.vlgmr.msra.gmra.mxu3 %vm89_vm7, %v423_v32 }
 0xb44   :  { %851 = vmatmul.msk.f32.vlgmr.msrb.gmra.mxu3 %vm89_vm7, %v613_v34 }
 0xb4c   :  { %852 = vmatmul.msk.f32.gmra.mxu3 %vm89_vm7, %v614_v37 }
 0xbbf   :  { %v446_v38 = vpop.f32.mrf.mxu3 }
 0xbc0   :  { %470 = vrot.lane.b32.xlu2 %v446_v38, %s975_s2  ;;  %v449_v45 = vadd.f32 %v446_v38, %v426_v44 }
 0xbc2   :  { %v844_v46 = vmul.f32 -1.442695, %v449_v45 }
 0xbc4   :  { %902 = vpow2.f32 %v844_v46 }
 0xbc7   :  { %v654_v40 = vpop.f32.mrf.mxu3 }
 0xbc8   :  { %v1176_v41 = vadd.f32 %v1173_v39, %v654_v40 }
 0xbca   :  { %667 = vst.msk [vmem:[%s1272_s9] sm:$0xff] %vm666_vm12, %v1176_v41  ;;  %v903_v47 = vpop.eup %902  ;;  %v676_v29 = vsub.f32 %v1176_v41, %v672_v28  ;;  %v680_v34 = vand.u32 2147483647, %v1176_v41 }
 0xbcb   :  { %v453_v48 = vadd.f32 1.0, %v903_v47 }
 0xbcc   :  { %v1209_v30 = vmul.f32 %v676_v29, %v676_v29  ;;  %v684_v35 = vadd.f32 1e-05, %v680_v34 }
 0xbcd   :  { %904 = vrcp.f32 %v453_v48  ;;  %v465_v54 = vand.u32 2147483648, %v453_v48  ;;  %vm459_vm14 = vweird.f32 %v453_v48  ;;  %v463_v55 = vand.u32 2147483647, %v453_v48 }
 0xbcf   :  { %v657_v42 = vpop.f32.mrf.mxu3  ;;  %v466_v57 = vor.u32 1.1754944e-38, %v465_v54  ;;  %vm464_vm1 = vcmp.eq.f32.partialorder %v463_v55, 8.507059e+37 }
 0xbd0   :  { %v1184_v43 = vadd.f32 %v1173_v39, %v657_v42 }
 0xbd2   :  { %668 = vst.msk [vmem:[%s1272_s9 + $0x8] sm:$0xff] %vm666_vm12, %v1184_v43 }
 0xbd3   :  { %v905_v49 = vpop.eup %904 }
 0xbd4   :  { %v455_v50 = vmul.f32 %v905_v49, %v453_v48  ;;  %vm460_vm13 = vweird.f32 %v905_v49 }
 0xbd5   :  { %vm461_vm15 = vmor %vm459_vm14, %vm460_vm13 }
 0xbd6   :  { %v456_v51 = vsub.f32 1.0, %v455_v50 }
 0xbd8   :  { %v457_v52 = vmul.f32 %v905_v49, %v456_v51 }
 0xbda   :  { %v458_v53 = vadd.f32 %v905_v49, %v457_v52 }
 0xbdc   :  { %v462_v56 = vsel %vm461_vm15, %v905_v49, %v458_v53  ;;  %v681_v53 = vand.u32 2147483647, %v1184_v43 }
 0xbdd   :  { %v467_v59 = vsel %vm464_vm1, %v466_v57, %v462_v56 }
 0xbde   :  { %v480_v0 = vsub.f32 1.0, %v467_v59  ;;  %v486_v2 = vmul.f32 %v467_v59, %v1142_v25  ;;  %v685_v54 = vadd.f32 1e-05, %v681_v53 }
 0xc1a   :  { %v471_v58 = vpop.permute.xlu2 %470 }
 0xc1b   :  { %v473_v60 = vmul.f32 %v471_v58, %v467_v59 }
 0xc1d   :  { %475 = vrot.lane.b32.xlu0 %v473_v60, %s975_s2 }
 0xc8f   :  { %v476_v61 = vpop.permute.xlu0 %475 }
 0xc90   :  { %v478_v62 = vadd.f32 %v476_v61, %v426_v44  ;;  %v673_v44 = vld [vmem:[%s1263_s0 + $0xc] sm:$0xff]  ;;  %v674_v61 = vld [vmem:[%s1263_s0 + $0x14] sm:$0xff] }
 0xc91   :  { %v677_v47 = vsub.f32 %v1184_v43, %v673_v44 }
 0xc92   :  { %906 = vtanh.f32 %v478_v62 }
 0xc93   :  { %v705_v49 = vmul.f32 %v677_v47, %v677_v47 }
 0xc98   :  { %v907_v63 = vpop.eup %906 }
 0xc99   :  { %482 = vrot.lane.b32.xlu1 %v907_v63, %s976_s20 }
 0xd0b   :  { %v483_v1 = vpop.permute.xlu1 %482 }
 0xd0c   :  { %v485_v3 = vmul.f32 %v483_v1, %v480_v0 }
 0xd0e   :  { %v1194_v4 = vadd.f32 %v486_v2, %v485_v3 }
 0xd10   :  { %489 = vrot.lane.b32.xlu2 %v1194_v4, %s976_s20 }
 0xd6a   :  { %v490_v5 = vpop.permute.xlu2 %489 }
 0xd6b   :  { %492 = vst.msk [vmem:[#allocation3 + $0x14] sm:$0xf] %vm156_vm6, %v490_v5  ;;  %845 = vmatmul.msk.f32.vlgmr.msrb.gmra.mxu1 %vm89_vm7, %v490_v5 }
 0xd72   :  { %v562_v6 = vld [vmem:[#allocation3 + $0x10] sm:$0xff] }
 0xd73   :  { %849 = vmatmul.msk.f32.gmra.mxu2 %vm89_vm7, %v562_v6 }
 0xde8   :  { %v513_v7 = vpop.f32.mrf.mxu1 }
 0xde9   :  { %537 = vrot.lane.b32.xlu0 %v513_v7, %s975_s2  ;;  %v516_v12 = vadd.f32 %v513_v7, %v493_v11 }
 0xdeb   :  { %v846_v13 = vmul.f32 -1.442695, %v516_v12 }
 0xded   :  { %908 = vpow2.f32 %v846_v13 }
 0xdf3   :  { %v909_v14 = vpop.eup %908 }
 0xdf4   :  { %v520_v15 = vadd.f32 1.0, %v909_v14 }
 0xdf6   :  { %v607_v8 = vpop.f32.mrf.mxu2  ;;  %910 = vrcp.f32 %v520_v15  ;;  %v532_v21 = vand.u32 2147483648, %v520_v15  ;;  %vm526_vm3 = vweird.f32 %v520_v15  ;;  %v530_v22 = vand.u32 2147483647, %v520_v15 }
 0xdf7   :  { %v608_v9 = vadd.f32 %v1161_v31, %v607_v8  ;;  %912 = vlog2.f32 %v684_v35 }
 0xdf8   :  { %v533_v24 = vor.u32 1.1754944e-38, %v532_v21  ;;  %vm531_vm5 = vcmp.eq.f32.partialorder %v530_v22, 8.507059e+37 }
 0xdf9   :  { %v615_v10 = vmax.f32 %v608_v9, 0.0 }
 0xdfb   :  { %853 = vmatmul.msk.f32.gmra.mxu3 %vm89_vm7, %v615_v10 }
 0xdfc   :  { %v911_v16 = vpop.eup %910 }
 0xdfd   :  { %v522_v17 = vmul.f32 %v911_v16, %v520_v15  ;;  %vm527_vm2 = vweird.f32 %v911_v16  ;;  %v913_v38 = vpop.eup %912 }
 0xdfe   :  { %vm528_vm4 = vmor %vm526_vm3, %vm527_vm2  ;;  %v689_v45 = vmul.f32 0.6931472, %v913_v38 }
 0xdff   :  { %v523_v18 = vsub.f32 1.0, %v522_v17 }
 0xe00   :  { %v696_v48 = vmul.f32 0.5, %v689_v45 }
 0xe01   :  { %v524_v19 = vmul.f32 %v911_v16, %v523_v18  ;;  %v675_v18 = vld [vmem:[%s1263_s0 + $0x1c] sm:$0xf]  ;;  %s979_s0 = smov [#allocation4]  }
 0xe02   :  { %v700_v50 = vsub.f32 -4.6051702, %v696_v48 }
 0xe03   :  { %v525_v20 = vadd.f32 %v911_v16, %v524_v19 }
 0xe05   :  { %v529_v23 = vsel %vm528_vm4, %v911_v16, %v525_v20 }
 0xe06   :  { %v534_v26 = vsel %vm531_vm5, %v533_v24, %v529_v23 }
 0xe07   :  { %v547_v55 = vsub.f32 1.0, %v534_v26  ;;  %v553_v57 = vmul.f32 %v534_v26, %v1194_v4 }
 0xe5b   :  { %v538_v25 = vpop.permute.xlu0 %537 }
 0xe5c   :  { %v540_v27 = vmul.f32 %v538_v25, %v534_v26 }
 0xe5e   :  { %542 = vrot.lane.b32.xlu1 %v540_v27, %s975_s2  ;;  %v777_v27 = vsel %vm36_vm0, %v705_v49, 0.0 }
 0xe66   :  { %712 = vrot.lane.b32.xlu1 %v1209_v30, %s977_s28 }
 0xe7e   :  { %v660_v32 = vpop.f32.mrf.mxu3 }
 0xe7f   :  { %v661_v33 = vadd.f32 %v1173_v39, %v660_v32 }
 0xe81   :  { %669 = vst.msk [vmem:[%s1272_s9 + $0x10] sm:$0xff] %vm666_vm12, %v661_v33  ;;  %v678_v63 = vsub.f32 %v661_v33, %v674_v61  ;;  %v682_v12 = vand.u32 2147483647, %v661_v33 }
 0xe83   :  { %v706_v3 = vmul.f32 %v678_v63, %v678_v63  ;;  %v686_v13 = vadd.f32 1e-05, %v682_v12 }
 0xe85   :  { %v779_v28 = vsel %vm36_vm0, %v706_v3, 0.0 }
 0xed0   :  { %v543_v36 = vpop.permute.xlu1 %542 }
 0xed1   :  { %v545_v37 = vadd.f32 %v543_v36, %v493_v11 }
 0xed3   :  { %914 = vtanh.f32 %v545_v37 }
 0xed4   :  { %916 = vlog2.f32 %v685_v54 }
 0xed5   :  { %918 = vlog2.f32 %v686_v13 }
 0xed8   :  { %v713_v42 = vpop.permute.xlu1 %712 }
 0xed9   :  { %v915_v40 = vpop.eup %914  ;;  %v724_v46 = vadd.f32 %v713_v42, %v684_v35 }
 0xeda   :  { %549 = vrot.lane.b32.xlu2 %v915_v40, %s976_s20  ;;  %v917_v59 = vpop.eup %916 }
 0xedb   :  { %v728_v41 = vmul.f32 5000.0, %v724_v46  ;;  %v691_v62 = vmul.f32 0.6931472, %v917_v59  ;;  %v919_v14 = vpop.eup %918 }
 0xedc   :  { %v693_v16 = vmul.f32 0.6931472, %v919_v14 }
 0xedd   :  { %v732_v51 = vadd.f32 %v728_v41, %v700_v50  ;;  %v697_v1 = vmul.f32 0.5, %v691_v62 }
 0xede   :  { %v698_v21 = vmul.f32 0.5, %v693_v16 }
 0xedf   :  { %v855_v52 = vadd.f32 -0.5, %v732_v51  ;;  %v701_v5 = vsub.f32 -4.6051702, %v697_v1 }
 0xee0   :  { %v702_v24 = vsub.f32 -4.6051702, %v698_v21 }
 0xee2   :  { %714 = vrot.lane.b32.xlu2 %v705_v49, %s977_s28 }
 0xeea   :  { %744 = vrot.lane.b32.xlu2 %v855_v52, %s978_s11 }
 0xf34   :  { %v550_v56 = vpop.permute.xlu2 %549 }
 0xf35   :  { %v552_v58 = vmul.f32 %v550_v56, %v547_v55 }
 0xf37   :  { %v554_v60 = vadd.f32 %v553_v57, %v552_v58 }
 0xf39   :  { %556 = vrot.lane.b32.xlu0 %v554_v60, %s976_s20 }
 0xf3c   :  { %v715_v0 = vpop.permute.xlu2 %714 }
 0xf3d   :  { %v725_v43 = vadd.f32 %v715_v0, %v685_v54 }
 0xf3f   :  { %v729_v2 = vmul.f32 5000.0, %v725_v43 }
 0xf41   :  { %716 = vrot.lane.b32.xlu0 %v706_v3, %s977_s28  ;;  %v733_v4 = vadd.f32 %v729_v2, %v701_v5 }
 0xf43   :  { %v856_v6 = vadd.f32 -0.5, %v733_v4 }
 0xf44   :  { %v745_v48 = vpop.permute.xlu2 %744 }
 0xf45   :  { %v756_v51 = vsel %vm36_vm0, %v745_v48, 0.0 }
 0xf49   :  { %746 = vrot.lane.b32.xlu0 %v856_v6, %s978_s11 }
 0xfab   :  { %v557_v7 = vpop.permute.xlu0 %556 }
 0xfac   :  { %559 = vst.msk [vmem:[#allocation3 + $0x18] sm:$0xf] %vm156_vm6, %v557_v7  ;;  %vm761_vm6 = vcmask 60416  }
 0xfb3   :  { %v563_v8 = vld [vmem:[#allocation3 + $0x18] sm:$0xf]  ;;  %v717_v15 = vpop.permute.xlu0 %716 }
 0xfb4   :  { %850 = vmatmul.msk.f32.gmra.mxu2 %vm89_vm7, %v563_v8  ;;  %v726_v19 = vadd.f32 %v717_v15, %v686_v13 }
 0xfb6   :  { %v730_v22 = vmul.f32 5000.0, %v726_v19 }
 0xfb8   :  { %v734_v25 = vadd.f32 %v730_v22, %v702_v24 }
 0xfba   :  { %v857_v26 = vadd.f32 -0.5, %v734_v25 }
 0xfbb   :  { %v747_v41 = vpop.permute.xlu0 %746 }
 0xfbc   :  { %v757_v50 = vsel %vm36_vm0, %v747_v41, 0.0 }
 0xfbd   :  { %v758_v53 = vadd.f32 %v757_v50, %v756_v51 }
0x1037   :  { %v610_v9 = vpop.f32.mrf.mxu2 }
0x1038   :  { %v611_v10 = vadd.f32 %v1161_v31, %v610_v9 }
0x103a   :  { %v616_v11 = vmax.f32 %v611_v10, 0.0 }
0x103c   :  { %854 = vmatmul.msk.f32.gmra.mxu3 %vm89_vm7, %v616_v11 }
0x10bf   :  { %v663_v17 = vpop.f32.mrf.mxu3 }
0x10c0   :  { %v664_v20 = vadd.f32 %v1173_v39, %v663_v17  ;;  %v776_v39 = vsel %vm36_vm0, %v1209_v30, 0.0 }
0x10c1   :  { %v778_v29 = vadd.f32 %v777_v27, %v776_v39 }
0x10c2   :  { %671 = vst.msk [vmem:[%s1272_s9 + $0x18] sm:$0xf] %vm670_vm8, %v664_v20  ;;  %v679_v31 = vsub.f32 %v664_v20, %v675_v18  ;;  %v683_v35 = vand.u32 2147483647, %v664_v20  ;;  %s799_s9 = sshll.u32 %s979_s0, 4  ;;  %s800_s9 = int_to_ptr.vmem [resolvable:$true] %s799_s9 }
0x10c3   :  { %v780_v33 = vadd.f32 %v779_v28, %v778_v29 }
0x10c4   :  { %v707_v23 = vmul.f32 %v679_v31, %v679_v31  ;;  %v687_v36 = vadd.f32 1e-05, %v683_v35 }
0x10c6   :  { %718 = vrot.lane.b32.xlu1 %v707_v23, %s977_s28  ;;  %v781_v32 = vsel %vm761_vm6, %v707_v23, 0.0  ;;  %920 = vlog2.f32 %v687_v36 }
0x10c7   :  { %v782_v34 = vadd.f32 %v781_v32, %v780_v33 }
0x10cc   :  { %v921_v37 = vpop.eup %920 }
0x10cd   :  { %v695_v38 = vmul.f32 0.6931472, %v921_v37 }
0x10ce   :  { %748 = vrot.lane.b32.xlu1 %v857_v26, %s978_s11 }
0x10cf   :  { %v699_v40 = vmul.f32 0.5, %v695_v38 }
0x10d1   :  { %v703_v45 = vsub.f32 -4.6051702, %v699_v40 }
0x10f8   :  { %783 = vadd.xlane.f32.xlu1 %v782_v34 }
0x1138   :  { %v719_v42 = vpop.permute.xlu1 %718 }
0x1139   :  { %v727_v44 = vadd.f32 %v719_v42, %v687_v36 }
0x113b   :  { %v731_v46 = vmul.f32 5000.0, %v727_v44 }
0x113d   :  { %v735_v47 = vadd.f32 %v731_v46, %v703_v45 }
0x113f   :  { %v858_v30 = vadd.f32 -0.5, %v735_v47 }
0x1140   :  { %v749_v49 = vpop.permute.xlu1 %748 }
0x1141   :  { %750 = vrot.lane.b32.xlu2 %v858_v30, %s978_s11  ;;  %v759_v52 = vsel %vm36_vm0, %v749_v49, 0.0  ;;  %vm774_vm0 = vcmask 0  }
0x1142   :  { %v760_v54 = vadd.f32 %v759_v52, %v758_v53 }
0x116b   :  { %v784_v58 = vpop.xlane.xlu1 %783 }
0x116c   :  { %v785_v59 = vrot.slane %v784_v58, 4 }
0x116e   :  { %v786_v60 = vadd.f32 %v785_v59, %v784_v58 }
0x1170   :  { %v787_v61 = vrot.slane %v786_v60, 2 }
0x1172   :  { %v788_v1 = vadd.f32 %v787_v61, %v786_v60 }
0x1174   :  { %v789_v3 = vrot.slane %v788_v1, 1 }
0x1176   :  { %v790_v6 = vadd.f32 %v789_v3, %v788_v1 }
0x119b   :  { %v751_v55 = vpop.permute.xlu2 %750 }
0x119c   :  { %v762_v56 = vsel %vm761_vm6, %v751_v55, 0.0 }
0x119d   :  { %v763_v57 = vadd.f32 %v762_v56, %v760_v54 }
0x119f   :  { %764 = vadd.xlane.f32.xlu0 %v763_v57 }
0x1212   :  { %v765_v62 = vpop.xlane.xlu0 %764 }
0x1213   :  { %v766_v63 = vrot.slane %v765_v62, 4 }
0x1215   :  { %v767_v0 = vadd.f32 %v766_v63, %v765_v62 }
0x1217   :  { %v768_v43 = vrot.slane %v767_v0, 2 }
0x1219   :  { %v769_v2 = vadd.f32 %v768_v43, %v767_v0 }
0x121b   :  { %v770_v5 = vrot.slane %v769_v2, 1 }
0x121d   :  { %v771_v4 = vadd.f32 %v770_v5, %v769_v2 }
0x121f   :  { %859 = vpush %v771_v4 }
0x1220   :  { %861 = vpush %v790_v6 }
0x1250   :  { %s860_s5 = spop %859 }
0x1251   :  { %v773_v7 = vstv %s860_s5  ;;  %s862_s23 = spop %861 }
0x1252   :  { %775 = vst.msk [vmem:[#allocation4] sm:$0x1] %vm774_vm0, %v773_v7  ;;  %v792_v8 = vstv %s862_s23 }
0x1253   :  { %793 = vst.msk [vmem:[#allocation6] sm:$0x1] %vm774_vm0, %v792_v8  ;;  %804 = dma.vmem_to_hbm [thread:$0]  %s800_s9, 16, %s802_s1, [#allocation5]  }
0x1254   :  { %815 = dma.vmem_to_hbm [thread:$0]  %s811_s19, 16, %s813_s4, [#allocation7]  }
0x1255   :  { %970 = dma.done.wait [#allocation5], 16  }
0x1256   :  { %971 = vsyncadd [#allocation5], 4294967280 }
0x1257   :  { %972 = dma.done.wait [#allocation7], 16  }
0x1258   :  { %973 = vsyncadd [#allocation7], 4294967280 }
0x1259   :  { %828 = vsyncpa [#allocation5], 1 }
0x125a   :  { %829 = vsyncpa [#allocation7], 1 }

</bundles_post_ra>
